<compile_context>
chip_gen: v5e
topology: v5e:2x2
jax: 0.10.0
libtpu: 0.0.40
codegen_flags: <defaults>
</compile_context>

<pallas_src>
import functools

import jax
import jax.numpy as jnp
from jax.experimental import pallas as pl
from jax.experimental.pallas import tpu as pltpu

_LANE = 128
_SUBLANE_BF16 = 16   # bf16 packs 16 rows per vreg sublane tile


def _rup(n, m):
    return ((n + m - 1) // m) * m


# ----------------------------------------------------------------------------
# Pallas kernel: 3 fused bf16 matmuls (biases folded in), f32 accumulation
# ----------------------------------------------------------------------------
def _actor_kernel(x_ref, p_ref, o_ref, *, d_pad, c):
    r_w2 = d_pad
    r_wh = d_pad + c

    x = x_ref[...]                                              # (tb, d_pad) bf16

    # layer 1: bias lives in row `d_in` of the W1 segment, driven by x's
    # constant-one lane; column `h1` propagates the constant one onward.
    h1 = jnp.dot(x, p_ref[:d_pad, :], preferred_element_type=jnp.float32)
    h1 = jnp.maximum(h1, 0.0).astype(jnp.bfloat16)              # (tb, c)

    # layer 2: same bias-folding trick (K = c, padded rows/cols are zero)
    h2 = jnp.dot(h1, p_ref[r_w2:r_w2 + c, :],
                 preferred_element_type=jnp.float32)
    h2 = jnp.maximum(h2, 0.0).astype(jnp.bfloat16)              # (tb, c)

    # fused heads [mu | log_std], lane-dense unmasked f32 store
    o_ref[...] = jnp.dot(h2, p_ref[r_wh:r_wh + c, :],
                         preferred_element_type=jnp.float32)


# ----------------------------------------------------------------------------
# Parameter construction (PyTorch-Linear-style uniform init) + packing
# ----------------------------------------------------------------------------
def _linear_init(key, fan_in, fan_out):
    kw, kb = jax.random.split(key)
    bound = 1.0 / jnp.sqrt(jnp.float32(fan_in))
    w = jax.random.uniform(kw, (fan_in, fan_out), jnp.float32, -bound, bound)
    b = jax.random.uniform(kb, (1, fan_out), jnp.float32, -bound, bound)
    return w, b


def make_actor_params(key, obs_dim, mlp_layer_dims, ac_dim):
    k1, k2, k3, k4 = jax.random.split(key, 4)
    w1, b1 = _linear_init(k1, obs_dim, mlp_layer_dims[0])
    w2, b2 = _linear_init(k2, mlp_layer_dims[0], mlp_layer_dims[1])
    wmu, bmu = _linear_init(k3, mlp_layer_dims[1], ac_dim)
    wls, bls = _linear_init(k4, mlp_layer_dims[1], ac_dim)
    return dict(w1=w1, b1=b1, w2=w2, b2=b2,
                wmu=wmu, bmu=bmu, wls=wls, bls=bls)


def pack_actor_params(params):
    """Pack weights+biases into one lane-dense (R, c) bf16 buffer.

    Row layout (each segment starts at a multiple of 128, spans all c lanes):
        [0          : d_pad)   W1 (d_in x h1) | bias row at d_in | one at (d_in,h1)
        [d_pad      : +c)      W2 (h1  x h2)  | bias row at h1   | one at (h1,h2)
        [d_pad + c  : +c)      Wh (h2  x 2A)  | bias row at h2
    Biases are folded into the matmuls via the constant-one lane in x.
    """
    w1, b1 = params["w1"], params["b1"]
    w2, b2 = params["w2"], params["b2"]
    wmu, bmu = params["wmu"], params["bmu"]
    wls, bls = params["wls"], params["bls"]

    d_in, h1 = w1.shape
    _, h2 = w2.shape
    ac_dim = wmu.shape[1]

    # fuse the two heads into one matmul
    wh = jnp.concatenate([wmu, wls], axis=1)                     # (h2, 2A)
    bh = jnp.concatenate([bmu, bls], axis=1)                     # (1, 2A)

    # +1 lane reserved for the constant-one (bias folding) in x / h1 / h2
    d_pad = _rup(d_in + 1, _LANE)
    c = max(_rup(h1 + 1, _LANE), _rup(h2 + 1, _LANE), _rup(2 * ac_dim, _LANE))

    r_w2 = d_pad
    r_wh = d_pad + c
    n_rows = d_pad + 2 * c

    buf = jnp.zeros((n_rows, c), jnp.float32)
    # layer 1
    buf = buf.at[:d_in, :h1].set(w1)
    buf = buf.at[d_in, :h1].set(b1[0])
    buf = buf.at[d_in, h1].set(1.0)          # propagate constant-one to h1
    # layer 2
    buf = buf.at[r_w2:r_w2 + h1, :h2].set(w2)
    buf = buf.at[r_w2 + h1, :h2].set(b2[0])
    buf = buf.at[r_w2 + h1, h2].set(1.0)     # propagate constant-one to h2
    # fused heads
    buf = buf.at[r_wh:r_wh + h2, :2 * ac_dim].set(wh)
    buf = buf.at[r_wh + h2, :2 * ac_dim].set(bh[0])

    buf = buf.astype(jnp.bfloat16)
    dims = dict(d_in=d_in, ac_dim=ac_dim, d_pad=d_pad, c=c)
    return buf, dims


# ----------------------------------------------------------------------------
# pallas_call wrapper: batch-tiled grid, resident weights, lane-dense output
# ----------------------------------------------------------------------------
def actor_forward_pallas(x_p, packed, dims, tb):
    """x_p: (b_pad, d_pad) bf16 padded/encoded obs. Returns (b_pad, c) f32."""
    b_pad, d_pad = x_p.shape
    c = dims["c"]

    kernel = functools.partial(_actor_kernel, d_pad=d_pad, c=c)

    return pl.pallas_call(
        kernel,
        out_shape=jax.ShapeDtypeStruct((b_pad, c), jnp.float32),
        grid=(b_pad // tb,),
        in_specs=[
            # activation stream: one (tb, d_pad) bf16 block per grid step
            pl.BlockSpec((tb, d_pad), lambda i: (i, 0)),
            # packed params: constant block index -> DMA'd once, VMEM resident
            pl.BlockSpec(packed.shape, lambda i: (0, 0)),
        ],
        out_specs=pl.BlockSpec((tb, c), lambda i: (i, 0)),
        compiler_params=pltpu.CompilerParams(
            dimension_semantics=("parallel",)),   # batch axis shards on v7x 2-TC
    )(x_p, packed)


# ----------------------------------------------------------------------------
# Encoder glue: flatten+concat low-dim obs straight into the padded bf16 layout
# ----------------------------------------------------------------------------
def encode_obs_padded(obs_dict, b_pad, d_pad, dtype=jnp.bfloat16):
    """Single fused producer: [obs parts | ones lane | zero lanes | zero rows]."""
    keys = sorted(obs_dict.keys())
    B = obs_dict[keys[0]].shape[0]
    parts = [obs_dict[k].reshape(B, -1).astype(dtype) for k in keys]
    d_in = sum(p.shape[1] for p in parts)
    parts.append(jnp.ones((B, 1), dtype))                      # constant-one lane
    if d_pad > d_in + 1:
        parts.append(jnp.zeros((B, d_pad - d_in - 1), dtype))  # lane padding
    x = jnp.concatenate(parts, axis=-1)                        # (B, d_pad)
    if b_pad > B:
        x = jnp.concatenate(
            [x, jnp.zeros((b_pad - B, d_pad), dtype)], axis=0)  # row padding
    return x


def encode_obs(obs_dict):
    """Plain f32 concat (used only by the pure-JAX reference)."""
    keys = sorted(obs_dict.keys())
    B = obs_dict[keys[0]].shape[0]
    return jnp.concatenate(
        [obs_dict[k].reshape(B, -1).astype(jnp.float32) for k in keys], axis=-1)


def actor_network_forward(obs_dict, packed, dims, goal_dict=None, *,
                          tb_max=2048):
    """Full ActorNetwork.forward: encoder + MLP + (mu, log_std) heads."""
    B = next(iter(obs_dict.values())).shape[0]
    # adaptive batch tile: fewest grid steps with tiles <= tb_max and minimal
    # row padding (avoids the ~2x waste when B is just above tb_max).
    # Note: on v7x, pass a smaller tb_max for large B so the grid has >= 2
    # steps and the "parallel" axis splits across both TensorCores.
    n_steps = max(1, pl.cdiv(B, tb_max))
    tb = _rup(pl.cdiv(B, n_steps), _SUBLANE_BF16)
    b_pad = tb * n_steps

    x_p = encode_obs_padded(obs_dict, b_pad, dims["d_pad"])
    out = actor_forward_pallas(x_p, packed, dims, tb)

    ac = dims["ac_dim"]
    mu = out[:B, :ac]
    log_std = out[:B, ac:2 * ac]
    return mu, log_std


# ----------------------------------------------------------------------------
# Reference (plain JAX, f32) for sanity checking
# ----------------------------------------------------------------------------
def actor_forward_ref(x, p):
    h1 = jnp.maximum(x @ p["w1"] + p["b1"], 0.0)
    h2 = jnp.maximum(h1 @ p["w2"] + p["b2"], 0.0)
    return h2 @ p["wmu"] + p["bmu"], h2 @ p["wls"] + p["bls"]


if __name__ == "__main__":
    key = jax.random.PRNGKey(0)
    k_obs, k_state, k_params = jax.random.split(key, 3)

    # small low-dim observation spec (robomimic-style low-dim modalities)
    B = 8
    obs_shapes = {"object": (10,), "robot0_proprio": (9,)}
    mlp_layer_dims = (32, 32)
    ac_dim = 7

    obs_dict = {
        "object": jax.random.normal(
            k_obs, (B,) + obs_shapes["object"], jnp.float32),
        "robot0_proprio": jax.random.normal(
            k_state, (B,) + obs_shapes["robot0_proprio"], jnp.float32),
    }
    obs_dim = sum(int(s[0]) for s in obs_shapes.values())

    params = make_actor_params(k_params, obs_dim, mlp_layer_dims, ac_dim)
    packed, dims = pack_actor_params(params)

    mu, log_std = actor_network_forward(obs_dict, packed, dims)
    jax.block_until_ready((mu, log_std))

    # verify against pure-JAX f32 reference (bf16 params/activations -> relax tol)
    x = encode_obs(obs_dict)
    mu_ref, ls_ref = actor_forward_ref(x, params)
    assert mu.shape == (B, ac_dim) and log_std.shape == (B, ac_dim)
    assert jnp.allclose(mu, mu_ref, atol=5e-2, rtol=1e-2), "mu mismatch"
    assert jnp.allclose(log_std, ls_ref, atol=5e-2, rtol=1e-2), "log_std mismatch"

    print("KERNEL_OK")
</pallas_src>

<mosaic_0001>
module attributes {stable_mosaic.version = 11 : i64} {
  func.func @_actor_kernel(%arg0: i32, %arg1: memref<16x128xbf16, #tpu.memory_space<vmem>>, %arg2: memref<384x128xbf16, #tpu.memory_space<vmem>>, %arg3: memref<16x128xf32, #tpu.memory_space<vmem>>) attributes {dimension_semantics = [#tpu.dimension_semantics<parallel>], iteration_bounds = array<i64: 1>, scalar_prefetch = 0 : i64, scratch_operands = 0 : i64, tpu.core_type = #tpu.core_type<tc>, window_params = [{transform_indices = @transform_0, window_bounds = array<i64: 16, 128>}, {pipeline_mode = #tpu.pipeline_mode<synchronous>, transform_indices = @transform_1, window_bounds = array<i64: 384, 128>}, {transform_indices = @transform_2, window_bounds = array<i64: 16, 128>}]} {
    %c0 = arith.constant 0 : index
    %c0_0 = arith.constant 0 : index
    %0 = vector.load %arg1[%c0, %c0_0] : memref<16x128xbf16, #tpu.memory_space<vmem>>, vector<16x128xbf16>
    %c0_1 = arith.constant 0 : index
    %c0_2 = arith.constant 0 : index
    %1 = vector.load %arg2[%c0_1, %c0_2] : memref<384x128xbf16, #tpu.memory_space<vmem>>, vector<128x128xbf16>
    %cst = arith.constant dense<0.000000e+00> : vector<16x128xf32>
    %2 = tpu.matmul %0, %1, %cst {dimension_numbers = #tpu.dot_dimension_numbers<[1], [0], [0], [1], [0, 0, 1, 1], [], []>} : vector<16x128xbf16>, vector<128x128xbf16>, vector<16x128xf32> -> vector<16x128xf32>
    %cst_3 = arith.constant 0.000000e+00 : f32
    %3 = vector.broadcast %cst_3 : f32 to vector<16x128xf32>
    %4 = arith.maximumf %2, %3 : vector<16x128xf32>
    %5 = arith.truncf %4 : vector<16x128xf32> to vector<16x128xbf16>
    %c128 = arith.constant 128 : index
    %c0_4 = arith.constant 0 : index
    %6 = vector.load %arg2[%c128, %c0_4] : memref<384x128xbf16, #tpu.memory_space<vmem>>, vector<128x128xbf16>
    %cst_5 = arith.constant dense<0.000000e+00> : vector<16x128xf32>
    %7 = tpu.matmul %5, %6, %cst_5 {dimension_numbers = #tpu.dot_dimension_numbers<[1], [0], [0], [1], [0, 0, 1, 1], [], []>} : vector<16x128xbf16>, vector<128x128xbf16>, vector<16x128xf32> -> vector<16x128xf32>
    %cst_6 = arith.constant 0.000000e+00 : f32
    %8 = vector.broadcast %cst_6 : f32 to vector<16x128xf32>
    %9 = arith.maximumf %7, %8 : vector<16x128xf32>
    %10 = arith.truncf %9 : vector<16x128xf32> to vector<16x128xbf16>
    %c256 = arith.constant 256 : index
    %c0_7 = arith.constant 0 : index
    %11 = vector.load %arg2[%c256, %c0_7] : memref<384x128xbf16, #tpu.memory_space<vmem>>, vector<128x128xbf16>
    %cst_8 = arith.constant dense<0.000000e+00> : vector<16x128xf32>
    %12 = tpu.matmul %10, %11, %cst_8 {dimension_numbers = #tpu.dot_dimension_numbers<[1], [0], [0], [1], [0, 0, 1, 1], [], []>} : vector<16x128xbf16>, vector<128x128xbf16>, vector<16x128xf32> -> vector<16x128xf32>
    %c0_9 = arith.constant 0 : index
    %c0_10 = arith.constant 0 : index
    %13 = vector.load %arg3[%c0_9, %c0_10] : memref<16x128xf32, #tpu.memory_space<vmem>>, vector<16x128xf32>
    tpu.vector_store %arg3[%c0_9, %c0_10], %12 {strides = array<i32>} : memref<16x128xf32, #tpu.memory_space<vmem>>, vector<16x128xf32>,
    return
  }
  func.func @transform_0(%arg0: i32) -> (i32, i32) {
    %c0_i32 = arith.constant 0 : i32
    %c0_i32_0 = arith.constant 0 : i32
    return %arg0, %c0_i32 : i32, i32
  }
  func.func @transform_1(%arg0: i32) -> (i32, i32) {
    %c0_i32 = arith.constant 0 : i32
    %c0_i32_0 = arith.constant 0 : i32
    %c0_i32_1 = arith.constant 0 : i32
    return %c0_i32, %c0_i32_0 : i32, i32
  }
  func.func @transform_2(%arg0: i32) -> (i32, i32) {
    %c0_i32 = arith.constant 0 : i32
    %c0_i32_0 = arith.constant 0 : i32
    return %arg0, %c0_i32 : i32, i32
  }
}

</mosaic_0001>

<bundles_post_ra>
// kernel: tpu_custom_call.1
= control target key start
LH: loop header
LB: loop body
LE: loop exit
PB: predicated region body
PF: predicated region fallthrough
CT: control target
= control target key end

     0   :  { %7 = vsyncpa [#allocation3], 0  ;;  %s555_s0 = inlined_call_operand.hbm [shape: bf16[16,128], index: 0, kind: input, shape index: {}]   ;;  %s556_s1 = inlined_call_operand.hbm [shape: bf16[384,128], index: 1, kind: input, shape index: {}]   ;;  %s557_s2 = inlined_call_operand.hbm [shape: f32[16,128], index: 2, kind: output, shape index: {}]  }
   0x1   :  { %8 = vsyncpa [#allocation6], 0 }
   0x2   :  { %9 = vsyncpa [#allocation4], 0  ;;  %s14_s11 = sshll.u32 %s555_s0, 4  ;;  %s524_s12 = smov [#allocation2]   ;;  %s15_s11 = int_to_ptr.hbm [resolvable:$true] %s14_s11 }
   0x3   :  { %s16_s13 = sshll.u32 %s524_s12, 4  ;;  %s27_s16 = sshll.u32 %s556_s1, 4  ;;  %s17_s13 = int_to_ptr.vmem [resolvable:$true] %s16_s13  ;;  %s28_s16 = int_to_ptr.hbm [resolvable:$true] %s27_s16 }
   0x4   :  { %s525_s17 = smov 64   ;;  %s526_s18 = smov 4  }
   0x5   :  { %22 = dma.hbm_to_vmem [thread:$0]  %s15_s11, 128, %s17_s13, [#allocation3], %s525_s17, %s525_s17, %s526_s18  }
   0x6   :  { %s527_s19 = smov [#allocation5]  }
   0x7   :  { %s29_s20 = sshll.u32 %s527_s19, 4  ;;  %s30_s20 = int_to_ptr.vmem [resolvable:$true] %s29_s20 }
   0x8   :  { %35 = dma.hbm_to_vmem [thread:$0]  %s28_s16, 3072, %s30_s20, [#allocation6], %s525_s17, %s525_s17, %s526_s18  }
   0x9   :  { %518 = dma.done.wait [#allocation3], 128  }
   0xa   :  { %519 = vsyncadd [#allocation3], 4294967168 }
   0xb   :  { %520 = dma.done.wait [#allocation6], 3072  }
   0xc   :  { %521 = vsyncadd [#allocation6], 4294964224  ;;  %v422_v0 = vld [vmem:[#allocation5 + $0x38] sm:$0xff]  ;;  %v421_v1 = vld [vmem:[#allocation5 + $0x30] sm:$0xff]  ;;  %s528_s0 = smov [#allocation7]   ;;  %s300_s23 = sshll.u32 %s557_s2, 4  ;;  %s301_s23 = int_to_ptr.hbm [resolvable:$true] %s300_s23 }
   0xd   :  { %116 = vmatpush.bf16.msra.mxu0 %v422_v0  ;;  %v430_v2 = vld [vmem:[#allocation5 + $0x78] sm:$0xff]  ;;  %v429_v3 = vld [vmem:[#allocation5 + $0x70] sm:$0xff]  ;;  %v420_v4 = vld [vmem:[#allocation5 + $0x28] sm:$0xff]  ;;  %s298_s1 = sshll.u32 %s528_s0, 4  ;;  %s529_s24 = smov 128   ;;  %s299_s1 = int_to_ptr.vmem [resolvable:$true] %s298_s1 }
   0xe   :  { %197 = vmatpush.bf16.msra.mxu1 %v430_v2  ;;  %v428_v5 = vld [vmem:[#allocation5 + $0x68] sm:$0xff]  ;;  %v419_v6 = vld [vmem:[#allocation5 + $0x20] sm:$0xff]  ;;  %v418_v8 = vld [vmem:[#allocation5 + $0x18] sm:$0xff]  ;;  %s530_s25 = smov 8  }
   0xf   :  { %v427_v7 = vld [vmem:[#allocation5 + $0x60] sm:$0xff]  ;;  %v426_v9 = vld [vmem:[#allocation5 + $0x58] sm:$0xff]  ;;  %v417_v10 = vld [vmem:[#allocation5 + $0x10] sm:$0xff] }
  0x10   :  { %v416_v11 = vld [vmem:[#allocation5 + $0x8] sm:$0xff]  ;;  %v415_v12 = vld [vmem:[#allocation5] sm:$0xff]  ;;  %v414_v13 = vld [vmem:[#allocation2] sm:$0xff] }
  0x11   :  { %117 = vmatpush.bf16.msra.mxu0 %v421_v1  ;;  %v425_v14 = vld [vmem:[#allocation5 + $0x50] sm:$0xff]  ;;  %v424_v15 = vld [vmem:[#allocation5 + $0x48] sm:$0xff]  ;;  %v423_v16 = vld [vmem:[#allocation5 + $0x40] sm:$0xff] }
  0x12   :  { %198 = vmatpush.bf16.msra.mxu1 %v429_v3  ;;  %v438_v17 = vld [vmem:[#allocation5 + $0xb8] sm:$0xff]  ;;  %v437_v18 = vld [vmem:[#allocation5 + $0xb0] sm:$0xff]  ;;  %v436_v19 = vld [vmem:[#allocation5 + $0xa8] sm:$0xff] }
  0x13   :  { %278 = vmatpush.bf16.msra.mxu2 %v438_v17  ;;  %v435_v20 = vld [vmem:[#allocation5 + $0xa0] sm:$0xff]  ;;  %v434_v21 = vld [vmem:[#allocation5 + $0x98] sm:$0xff]  ;;  %v433_v27 = vld [vmem:[#allocation5 + $0x90] sm:$0xff] }
  0x14   :  { %v432_v28 = vld [vmem:[#allocation5 + $0x88] sm:$0xff]  ;;  %v431_v29 = vld [vmem:[#allocation5 + $0x80] sm:$0xff] }
  0x15   :  { %118 = vmatpush.bf16.msra.mxu0 %v420_v4 }
  0x16   :  { %199 = vmatpush.bf16.msra.mxu1 %v428_v5 }
  0x17   :  { %279 = vmatpush.bf16.msra.mxu2 %v437_v18 }
  0x19   :  { %119 = vmatpush.bf16.msra.mxu0 %v419_v6 }
  0x1a   :  { %200 = vmatpush.bf16.msra.mxu1 %v427_v7 }
  0x1b   :  { %280 = vmatpush.bf16.msra.mxu2 %v436_v19 }
  0x1d   :  { %120 = vmatpush.bf16.msra.mxu0 %v418_v8 }
  0x1e   :  { %201 = vmatpush.bf16.msra.mxu1 %v426_v9 }
  0x1f   :  { %281 = vmatpush.bf16.msra.mxu2 %v435_v20 }
  0x21   :  { %121 = vmatpush.bf16.msra.mxu0 %v417_v10 }
  0x22   :  { %202 = vmatpush.bf16.msra.mxu1 %v425_v14 }
  0x23   :  { %282 = vmatpush.bf16.msra.mxu2 %v434_v21 }
  0x25   :  { %122 = vmatpush.bf16.msra.mxu0 %v416_v11 }
  0x26   :  { %203 = vmatpush.bf16.msra.mxu1 %v424_v15 }
  0x27   :  { %283 = vmatpush.bf16.msra.mxu2 %v433_v27 }
  0x29   :  { %123 = vmatpush.bf16.msra.mxu0 %v415_v12 }
  0x2a   :  { %204 = vmatpush.bf16.msra.mxu1 %v423_v16 }
  0x2b   :  { %284 = vmatpush.bf16.msra.mxu2 %v432_v28 }
  0x2c   :  { %124 = vmatmul.bf16.vlgmr.msra.gmra.mxu0 %v414_v13 }
  0x2f   :  { %285 = vmatpush.bf16.msra.mxu2 %v431_v29 }
  0xa9   :  { %v125_v22 = vpop.f32.mrf.mxu0 }
  0xaa   :  { %v130_v24 = vmax.f32 %v125_v22, 0.0 }
  0xb1   :  { %v127_v23 = vpop.f32.mrf.mxu0 }
  0xb2   :  { %v131_v25 = vmax.f32 %v127_v23, 0.0 }
  0xb4   :  { %v132_v26 = vpack.c.bf16 %v131_v25, %v130_v24 }
  0xb6   :  { %205 = vmatmul.bf16.vlgmr.msra.gmra.mxu1 %v132_v26 }
 0x133   :  { %v206_v30 = vpop.f32.mrf.mxu1 }
 0x134   :  { %v211_v32 = vmax.f32 %v206_v30, 0.0 }
 0x13b   :  { %v208_v31 = vpop.f32.mrf.mxu1 }
 0x13c   :  { %v212_v33 = vmax.f32 %v208_v31, 0.0 }
 0x13e   :  { %v213_v34 = vpack.c.bf16 %v212_v33, %v211_v32 }
 0x140   :  { %286 = vmatmul.bf16.vlgmr.msra.gmra.mxu2 %v213_v34 }
 0x1c3   :  { %v287_v35 = vpop.f32.mrf.mxu2 }
 0x1c4   :  { %292 = vst [vmem:[#allocation7] sm:$0xff] %v287_v35 }
 0x1cb   :  { %v289_v36 = vpop.f32.mrf.mxu2 }
 0x1cc   :  { %293 = vst [vmem:[#allocation7 + $0x8] sm:$0xff] %v289_v36 }
 0x1cd   :  { %306 = dma.vmem_to_hbm [thread:$0]  %s299_s1, 256, %s301_s23, [#allocation4], %s529_s24, %s529_s24, %s530_s25  }
 0x1ce   :  { %522 = dma.done.wait [#allocation4], 256  }
 0x1cf   :  { %523 = vsyncadd [#allocation4], 4294967040 }
 0x1d0   :  { %311 = vsyncpa [#allocation3], 1 }
 0x1d1   :  { %312 = vsyncpa [#allocation6], 1 }
 0x1d2   :  { %313 = vsyncpa [#allocation4], 1 }

</bundles_post_ra>
